<compile_context>
chip_gen: v7x
topology: tpu7x:2x2x1
jax: 0.10.0
libtpu: 0.0.40
codegen_flags: <defaults>
</compile_context>

<pallas_src>
import functools

import numpy as np

import jax
import jax.numpy as jnp
from jax import lax
from jax.experimental import pallas as pl
from jax.experimental.pallas import tpu as pltpu

LANE = 128
NUM_BLOCKS = 6   # fold, fc1, fc2, heads(mean|log_std), post(block-diag), out-adapters(block-diag)
BIAS_ROWS = 8    # bias slab rows (>= NUM_BLOCKS, padded to the sublane multiple)
_HI = jax.lax.Precision.HIGHEST


def _round_up(x, m):
    return ((x + m - 1) // m) * m


def _ns_pad_for(ns, weight_dtype):
    """Lane padding for the state: one full sublane tile of the weight slab."""
    mult = 8 * (4 // np.dtype(weight_dtype).itemsize)   # f32 -> 8, bf16 -> 16
    return _round_up(max(ns, 1), mult)


def _choose_tiling(batch, max_tile_b):
    """Padding-aware batch tiling; even tile count for large batches (v7x megacore)."""
    n_tiles = -(-batch // max_tile_b)
    if batch >= 1024:                      # large batch: keep both v7x TensorCores busy
        n_tiles = max(n_tiles, 2)
        n_tiles += n_tiles % 2
    tile_b = max(8, _round_up(-(-batch // n_tiles), 8))
    return tile_b, n_tiles


def _packed_forward_math(x, wslab, biases, old_action, new_action, precision=None):
    """Shared by the Pallas kernel body (wslab = weight Ref, biases = loaded value)
    and the plain-JAX packed reference (wslab/biases = arrays).

    x: (rows, k0) f32.  wslab: (6*128, 128).  biases: (8, 128) f32.
    Returns (rows, 128) f32: lanes [0,NA)=mean, [NA,2NA)=std, rest 0.
    """
    f32 = jnp.float32
    w_dtype = wslab.dtype
    rows = x.shape[0]

    # Hoisted lane masks (reused by all three where-cascades below).
    col = lax.broadcasted_iota(jnp.int32, (rows, LANE), 1)
    m_oa, m_2oa = col < old_action, col < 2 * old_action
    m_na, m_2na = col < new_action, col < 2 * new_action

    def layer(h, i, relu, k=LANE):
        w = wslab[i * LANE:i * LANE + k, :]                    # static slice of the slab
        y = jnp.dot(h.astype(w_dtype), w,
                    preferred_element_type=f32, precision=precision)
        y = y + biases[i:i + 1, :]
        return jnp.maximum(y, 0.0) if relu else y

    # NOTE: exp/log below are evaluated on all 128 lanes and then select-masked;
    # keep jnp.where (select) semantics -- do not refactor to multiplicative masks.
    h = layer(x, 0, True, k=x.shape[1])   # folded input_adapter o pre_input_layer (+ReLU)
    h = layer(h, 1, True)                 # pretrained fc1 (+ReLU)
    h = layer(h, 2, True)                 # pretrained fc2 (+ReLU)
    h = layer(h, 3, False)                # fused heads: [0,OA)=mean, [OA,2OA)=log_std
    u = jnp.where(m_oa, h, jnp.where(m_2oa, jnp.exp(h), 0.0))        # std = exp(log_std)
    v = layer(u, 4, True)                 # shared post_output_layer on mean|std (+ReLU)
    z = jnp.where(m_oa, v, jnp.where(m_2oa, jnp.log(v + 1e-6), 0.0))
    r = layer(z, 5, False)                # both output adapters (block-diagonal)
    return jnp.where(m_na, r, jnp.where(m_2na, jnp.exp(r), 0.0))


def adapted_policy_kernel(x_ref, w_ref, b_ref, out_ref, *, old_action, new_action):
    """x_ref: (TILE_B, ns_pad) f32; w_ref: (768,128); b_ref: (8,128) f32; out_ref: (TILE_B,128)."""
    out_ref[...] = _packed_forward_math(
        x_ref[...].astype(jnp.float32), w_ref, b_ref[...], old_action, new_action)


def pack_params(p, new_action, old_action, weight_dtype=jnp.bfloat16):
    """Pack every layer into one (6*128,128) weight slab + one (8,128) f32 bias slab.

    Block i = slab rows [i*128,(i+1)*128):
      0: wfold = input_adapter @ pre_input_layer (exact fold, no nonlinearity between)
      1: fc1   2: fc2
      3: [mean_layer | log_std_layer] side by side in columns [0,OA) / [OA,2OA)
      4: post_output_layer duplicated block-diagonally (applied to mean and std at once)
      5: output_adapter_mean / output_adapter_std block-diagonally
    """
    new_state, old_state = p["wa"].shape
    hidden = p["w1"].shape[1]
    assert new_state <= LANE and old_state <= LANE and hidden <= LANE, \
        "state/hidden dims must fit a single 128-lane tile"
    assert 2 * old_action <= LANE and 2 * new_action <= LANE, \
        "fused head / adapter blocks must fit 128 lanes"

    def wblock(pairs):
        w = jnp.zeros((LANE, LANE), jnp.float32)
        for r0, c0, mat in pairs:
            w = w.at[r0:r0 + mat.shape[0], c0:c0 + mat.shape[1]].set(mat)
        return w

    def brow(pairs):
        b = jnp.zeros((1, LANE), jnp.float32)
        for c0, vec in pairs:
            v = vec.reshape(-1)
            b = b.at[0, c0:c0 + v.shape[0]].set(v)
        return b

    # Exact fold of input_adapter into pre_input_layer (done in f32, HIGHEST precision).
    wfold = jnp.dot(p["wa"], p["wp"], precision=_HI)
    bfold = jnp.dot(p["ba"], p["wp"], precision=_HI) + p["bp"]

    blocks = [
        wblock([(0, 0, wfold)]),
        wblock([(0, 0, p["w1"])]),
        wblock([(0, 0, p["w2"])]),
        wblock([(0, 0, p["wm"]), (0, old_action, p["ws"])]),
        wblock([(0, 0, p["wpo"]), (old_action, old_action, p["wpo"])]),
        wblock([(0, 0, p["wom"]), (old_action, new_action, p["wos"])]),
    ]
    wslab = jnp.concatenate(blocks, axis=0).astype(weight_dtype)       # (768, 128)

    brows = [
        brow([(0, bfold)]),
        brow([(0, p["b1"])]),
        brow([(0, p["b2"])]),
        brow([(0, p["bm"]), (old_action, p["bs"])]),
        brow([(0, p["bpo"]), (old_action, p["bpo"])]),
        brow([(0, p["bom"]), (new_action, p["bos"])]),
    ]
    bslab = jnp.concatenate(
        brows + [jnp.zeros((BIAS_ROWS - NUM_BLOCKS, LANE), jnp.float32)], axis=0)  # (8,128) f32
    return wslab, bslab


def adapted_policy_forward(state, wslab, bslab, new_action, old_action, max_tile_b=2048):
    """state: (B, new_state_dim). Returns (mean, std), each (B, new_action) f32."""
    B, ns = state.shape
    assert ns <= LANE
    ns_pad = _ns_pad_for(ns, wslab.dtype)
    tile_b, n_tiles = _choose_tiling(B, max_tile_b)
    b_pad = tile_b * n_tiles

    # Only row-pad + a tiny lane-pad (ns -> 8/16); never inflate to 128 lanes in HBM.
    x = state.astype(jnp.float32)
    if (b_pad, ns_pad) != (B, ns):
        x = jnp.zeros((b_pad, ns_pad), jnp.float32).at[:B, :ns].set(x)

    kernel = functools.partial(adapted_policy_kernel,
                               old_action=old_action, new_action=new_action)

    # VMEM / step at tile_b=2048: out 2x1MiB + in 2x128KiB + weights <=0.75MiB  ~= 3 MiB,
    # comfortably under the 16/32 MiB scoped defaults on v5e/v6e/v7x.
    def build(resident_kwargs):
        return pl.pallas_call(
            kernel,
            out_shape=jax.ShapeDtypeStruct((b_pad, LANE), jnp.float32),
            grid_spec=pltpu.PrefetchScalarGridSpec(
                num_scalar_prefetch=0,
                grid=(n_tiles,),
                in_specs=[
                    pl.BlockSpec((tile_b, ns_pad), lambda i: (i, 0)),          # state tile
                    pl.BlockSpec((NUM_BLOCKS * LANE, LANE), lambda i: (0, 0),
                                 **resident_kwargs),                           # weights (resident)
                    pl.BlockSpec((BIAS_ROWS, LANE), lambda i: (0, 0),
                                 **resident_kwargs),                           # biases (resident)
                ],
                out_specs=pl.BlockSpec((tile_b, LANE), lambda i: (i, 0)),
            ),
            compiler_params=pltpu.CompilerParams(
                dimension_semantics=("parallel",)),     # batch tiles -> both v7x TensorCores
        )(x, wslab, bslab)

    try:
        # Constant index_map + single buffer: the slabs are DMA'd once, no second buffer.
        out = build(dict(pipeline_mode=pl.Buffered(1)))
        jax.block_until_ready(out)
    except Exception:  # pl.Buffered(1)/pipeline_mode unsupported -> default double buffering
        out = build({})

    head = out[:B, :2 * new_action]            # single narrow slice of the padded result
    return head[:, :new_action], head[:, new_action:]


def make_params(key, new_state, old_state, new_action, old_action, hidden):
    """Deterministic synthetic parameters. Weights are (in, out); biases (1, out).

    post_output_layer (wpo/bpo) is kept strictly positive so the std path's
    log(relu(.)+1e-6) never sits at the ReLU kink; this keeps the bf16-vs-f32
    numerical comparison in the test well conditioned without changing the
    computation being exercised.
    """
    def linear(k, din, dout, scale=0.3):
        kw, kb = jax.random.split(k)
        w = scale * jax.random.normal(kw, (din, dout), jnp.float32)
        b = 0.05 * jax.random.normal(kb, (1, dout), jnp.float32)
        return w, b

    keys = jax.random.split(key, 9)
    p = {}
    p["wa"], p["ba"] = linear(keys[0], new_state, old_state)
    p["wp"], p["bp"] = linear(keys[1], old_state, old_state)
    p["w1"], p["b1"] = linear(keys[2], old_state, hidden)
    p["w2"], p["b2"] = linear(keys[3], hidden, hidden)
    p["wm"], p["bm"] = linear(keys[4], hidden, old_action, scale=0.1)
    p["ws"], p["bs"] = linear(keys[5], hidden, old_action, scale=0.1)
    kw, kb = jax.random.split(keys[6])
    p["wpo"] = 0.15 + 0.15 * jnp.abs(jax.random.normal(kw, (old_action, old_action), jnp.float32))
    p["bpo"] = 0.05 + 0.05 * jnp.abs(jax.random.normal(kb, (1, old_action), jnp.float32))
    p["wom"], p["bom"] = linear(keys[7], old_action, new_action)
    p["wos"], p["bos"] = linear(keys[8], old_action, new_action, scale=0.1)
    return p


def reference_forward(state, p):
    """Pure-JAX reference reproducing the PyTorch AdaptedPolicyNetwork.forward."""
    mm = lambda a, b: jnp.dot(a, b, precision=_HI)
    x = mm(state, p["wa"]) + p["ba"]
    x = jnp.maximum(mm(x, p["wp"]) + p["bp"], 0.0)
    h = jnp.maximum(mm(x, p["w1"]) + p["b1"], 0.0)
    h = jnp.maximum(mm(h, p["w2"]) + p["b2"], 0.0)
    mean = mm(h, p["wm"]) + p["bm"]
    std = jnp.exp(mm(h, p["ws"]) + p["bs"])
    mean = jnp.maximum(mm(mean, p["wpo"]) + p["bpo"], 0.0)
    std = jnp.maximum(mm(std, p["wpo"]) + p["bpo"], 0.0)
    log_std = mm(jnp.log(std + 1e-6), p["wos"]) + p["bos"]
    mean = mm(mean, p["wom"]) + p["bom"]
    std = jnp.exp(log_std)
    return mean, std


if __name__ == "__main__":
    # Small synthetic problem sizes consistent with the module's __init__.
    B = 8
    NEW_STATE_DIM = 6
    OLD_STATE_DIM = 8
    NEW_ACTION_DIM = 3
    OLD_ACTION_DIM = 4
    HIDDEN = 32

    root = jax.random.PRNGKey(0)
    k_state, k_state2, k_params = jax.random.split(root, 3)

    state = jax.random.normal(k_state, (B, NEW_STATE_DIM), jnp.float32)
    params = make_params(k_params, NEW_STATE_DIM, OLD_STATE_DIM,
                         NEW_ACTION_DIM, OLD_ACTION_DIM, HIDDEN)
    ref_mean, ref_std = reference_forward(state, params)

    # ---- 1) Packing/folding/fusion semantics (plain JAX, f32, HIGHEST precision). ----
    wslab32, bslab = pack_params(params, NEW_ACTION_DIM, OLD_ACTION_DIM,
                                 weight_dtype=jnp.float32)
    pk32 = _packed_forward_math(state, wslab32, bslab,
                                OLD_ACTION_DIM, NEW_ACTION_DIM, precision=_HI)
    assert jnp.allclose(pk32[:, :NEW_ACTION_DIM], ref_mean, atol=1e-4, rtol=1e-3), (
        float(jnp.max(jnp.abs(pk32[:, :NEW_ACTION_DIM] - ref_mean))))
    assert jnp.allclose(pk32[:, NEW_ACTION_DIM:2 * NEW_ACTION_DIM], ref_std,
                        atol=1e-4, rtol=1e-3), (
        float(jnp.max(jnp.abs(pk32[:, NEW_ACTION_DIM:2 * NEW_ACTION_DIM] - ref_std))))

    # ---- 2) Default (bf16-weight) Pallas kernel path. ----
    wslab, bslab = pack_params(params, NEW_ACTION_DIM, OLD_ACTION_DIM)  # bf16 slab
    mean, std = adapted_policy_forward(state, wslab, bslab,
                                       NEW_ACTION_DIM, OLD_ACTION_DIM)
    jax.block_until_ready((mean, std))
    assert mean.shape == (B, NEW_ACTION_DIM) and std.shape == (B, NEW_ACTION_DIM)

    # Kernel vs. the identical packed math in plain JAX (same bf16 slab): only
    # accumulation order / transcendental ULPs differ.
    pk16 = _packed_forward_math(state, wslab, bslab, OLD_ACTION_DIM, NEW_ACTION_DIM)
    assert jnp.allclose(mean, pk16[:, :NEW_ACTION_DIM], atol=1e-2, rtol=1e-2), (
        float(jnp.max(jnp.abs(mean - pk16[:, :NEW_ACTION_DIM]))))
    assert jnp.allclose(std, pk16[:, NEW_ACTION_DIM:2 * NEW_ACTION_DIM],
                        atol=1e-2, rtol=1e-2), (
        float(jnp.max(jnp.abs(std - pk16[:, NEW_ACTION_DIM:2 * NEW_ACTION_DIM]))))

    # Loose end-to-end check against the f32 module reference (bf16 weight path);
    # std is compared only structurally because log(relu(.)+1e-6) amplifies the
    # bf16-vs-f32 difference through the exp at the end.
    assert jnp.allclose(mean, ref_mean, atol=5e-2, rtol=5e-2), (
        float(jnp.max(jnp.abs(mean - ref_mean))))
    assert bool(jnp.all(std > 0.0)) and bool(jnp.all(jnp.isfinite(std)))

    # ---- 3) Multi-tile grid path (uneven batch, >1 grid step, row padding). ----
    B2 = 200
    state2 = jax.random.normal(k_state2, (B2, NEW_STATE_DIM), jnp.float32)
    mean2, std2 = adapted_policy_forward(state2, wslab, bslab,
                                         NEW_ACTION_DIM, OLD_ACTION_DIM,
                                         max_tile_b=64)        # -> 4 balanced tiles of 56 rows
    jax.block_until_ready((mean2, std2))
    pk2 = _packed_forward_math(state2, wslab, bslab, OLD_ACTION_DIM, NEW_ACTION_DIM)
    assert jnp.allclose(mean2, pk2[:, :NEW_ACTION_DIM], atol=1e-2, rtol=1e-2)
    assert jnp.allclose(std2, pk2[:, NEW_ACTION_DIM:2 * NEW_ACTION_DIM],
                        atol=1e-2, rtol=1e-2)
    assert bool(jnp.all(std2 > 0.0))

    print("KERNEL_OK")
</pallas_src>

<mosaic_0001>
module attributes {stable_mosaic.version = 11 : i64} {
  func.func @adapted_policy_kernel(%arg0: i32, %arg1: memref<8x16xf32, #tpu.memory_space<vmem>>, %arg2: memref<768x128xbf16, #tpu.memory_space<vmem>>, %arg3: memref<8x128xf32, #tpu.memory_space<vmem>>, %arg4: memref<8x128xf32, #tpu.memory_space<vmem>>) attributes {dimension_semantics = [#tpu.dimension_semantics<parallel>], iteration_bounds = array<i64: 1>, scalar_prefetch = 0 : i64, scratch_operands = 0 : i64, tpu.core_type = #tpu.core_type<tc>, window_params = [{transform_indices = @transform_0, window_bounds = array<i64: 8, 16>}, {pipeline_mode = #tpu.pipeline_mode<synchronous>, transform_indices = @transform_1, window_bounds = array<i64: 768, 128>}, {pipeline_mode = #tpu.pipeline_mode<synchronous>, transform_indices = @transform_2, window_bounds = array<i64: 8, 128>}, {transform_indices = @transform_3, window_bounds = array<i64: 8, 128>}]} {
    %c0 = arith.constant 0 : index
    %c0_0 = arith.constant 0 : index
    %0 = vector.load %arg1[%c0, %c0_0] : memref<8x16xf32, #tpu.memory_space<vmem>>, vector<8x16xf32>
    %c0_1 = arith.constant 0 : index
    %c0_2 = arith.constant 0 : index
    %1 = vector.load %arg3[%c0_1, %c0_2] : memref<8x128xf32, #tpu.memory_space<vmem>>, vector<8x128xf32>
    %2 = tpu.iota {dimensions = array<i32: 1>} : vector<8x128xi32>
    %c4_i32 = arith.constant 4 : i32
    %3 = vector.broadcast %c4_i32 : i32 to vector<8x128xi32>
    %4 = arith.cmpi slt, %2, %3 : vector<8x128xi32>
    %c8_i32 = arith.constant 8 : i32
    %5 = vector.broadcast %c8_i32 : i32 to vector<8x128xi32>
    %6 = arith.cmpi slt, %2, %5 : vector<8x128xi32>
    %c3_i32 = arith.constant 3 : i32
    %7 = vector.broadcast %c3_i32 : i32 to vector<8x128xi32>
    %8 = arith.cmpi slt, %2, %7 : vector<8x128xi32>
    %c6_i32 = arith.constant 6 : i32
    %9 = vector.broadcast %c6_i32 : i32 to vector<8x128xi32>
    %10 = arith.cmpi slt, %2, %9 : vector<8x128xi32>
    %c0_3 = arith.constant 0 : index
    %c0_4 = arith.constant 0 : index
    %11 = vector.load %arg2[%c0_3, %c0_4] : memref<768x128xbf16, #tpu.memory_space<vmem>>, vector<16x128xbf16>
    %12 = arith.truncf %0 : vector<8x16xf32> to vector<8x16xbf16>
    %cst = arith.constant dense<0.000000e+00> : vector<8x128xf32>
    %13 = tpu.matmul %12, %11, %cst {dimension_numbers = #tpu.dot_dimension_numbers<[1], [0], [0], [1], [0, 0, 1, 1], [], []>} : vector<8x16xbf16>, vector<16x128xbf16>, vector<8x128xf32> -> vector<8x128xf32>
    %14 = vector.extract_strided_slice %1 {offsets = [0, 0], sizes = [1, 128], strides = [1, 1]} : vector<8x128xf32> to vector<1x128xf32>
    %15 = vector.broadcast %14 : vector<1x128xf32> to vector<8x128xf32>
    %16 = arith.addf %13, %15 : vector<8x128xf32>
    %cst_5 = arith.constant 0.000000e+00 : f32
    %17 = vector.broadcast %cst_5 : f32 to vector<8x128xf32>
    %18 = arith.maximumf %16, %17 : vector<8x128xf32>
    %c128 = arith.constant 128 : index
    %c0_6 = arith.constant 0 : index
    %19 = vector.load %arg2[%c128, %c0_6] : memref<768x128xbf16, #tpu.memory_space<vmem>>, vector<128x128xbf16>
    %20 = arith.truncf %18 : vector<8x128xf32> to vector<8x128xbf16>
    %cst_7 = arith.constant dense<0.000000e+00> : vector<8x128xf32>
    %21 = tpu.matmul %20, %19, %cst_7 {dimension_numbers = #tpu.dot_dimension_numbers<[1], [0], [0], [1], [0, 0, 1, 1], [], []>} : vector<8x128xbf16>, vector<128x128xbf16>, vector<8x128xf32> -> vector<8x128xf32>
    %22 = vector.extract_strided_slice %1 {offsets = [1, 0], sizes = [1, 128], strides = [1, 1]} : vector<8x128xf32> to vector<1x128xf32>
    %23 = vector.broadcast %22 : vector<1x128xf32> to vector<8x128xf32>
    %24 = arith.addf %21, %23 : vector<8x128xf32>
    %cst_8 = arith.constant 0.000000e+00 : f32
    %25 = vector.broadcast %cst_8 : f32 to vector<8x128xf32>
    %26 = arith.maximumf %24, %25 : vector<8x128xf32>
    %c256 = arith.constant 256 : index
    %c0_9 = arith.constant 0 : index
    %27 = vector.load %arg2[%c256, %c0_9] : memref<768x128xbf16, #tpu.memory_space<vmem>>, vector<128x128xbf16>
    %28 = arith.truncf %26 : vector<8x128xf32> to vector<8x128xbf16>
    %cst_10 = arith.constant dense<0.000000e+00> : vector<8x128xf32>
    %29 = tpu.matmul %28, %27, %cst_10 {dimension_numbers = #tpu.dot_dimension_numbers<[1], [0], [0], [1], [0, 0, 1, 1], [], []>} : vector<8x128xbf16>, vector<128x128xbf16>, vector<8x128xf32> -> vector<8x128xf32>
    %30 = vector.extract_strided_slice %1 {offsets = [2, 0], sizes = [1, 128], strides = [1, 1]} : vector<8x128xf32> to vector<1x128xf32>
    %31 = vector.broadcast %30 : vector<1x128xf32> to vector<8x128xf32>
    %32 = arith.addf %29, %31 : vector<8x128xf32>
    %cst_11 = arith.constant 0.000000e+00 : f32
    %33 = vector.broadcast %cst_11 : f32 to vector<8x128xf32>
    %34 = arith.maximumf %32, %33 : vector<8x128xf32>
    %c384 = arith.constant 384 : index
    %c0_12 = arith.constant 0 : index
    %35 = vector.load %arg2[%c384, %c0_12] : memref<768x128xbf16, #tpu.memory_space<vmem>>, vector<128x128xbf16>
    %36 = arith.truncf %34 : vector<8x128xf32> to vector<8x128xbf16>
    %cst_13 = arith.constant dense<0.000000e+00> : vector<8x128xf32>
    %37 = tpu.matmul %36, %35, %cst_13 {dimension_numbers = #tpu.dot_dimension_numbers<[1], [0], [0], [1], [0, 0, 1, 1], [], []>} : vector<8x128xbf16>, vector<128x128xbf16>, vector<8x128xf32> -> vector<8x128xf32>
    %38 = vector.extract_strided_slice %1 {offsets = [3, 0], sizes = [1, 128], strides = [1, 1]} : vector<8x128xf32> to vector<1x128xf32>
    %39 = vector.broadcast %38 : vector<1x128xf32> to vector<8x128xf32>
    %40 = arith.addf %37, %39 : vector<8x128xf32>
    %41 = math.exp %40 : vector<8x128xf32>
    %cst_14 = arith.constant 0.000000e+00 : f32
    %42 = vector.broadcast %cst_14 : f32 to vector<8x128xf32>
    %43 = arith.select %6, %41, %42 : vector<8x128xi1>, vector<8x128xf32>
    %44 = arith.select %4, %40, %43 : vector<8x128xi1>, vector<8x128xf32>
    %c512 = arith.constant 512 : index
    %c0_15 = arith.constant 0 : index
    %45 = vector.load %arg2[%c512, %c0_15] : memref<768x128xbf16, #tpu.memory_space<vmem>>, vector<128x128xbf16>
    %46 = arith.truncf %44 : vector<8x128xf32> to vector<8x128xbf16>
    %cst_16 = arith.constant dense<0.000000e+00> : vector<8x128xf32>
    %47 = tpu.matmul %46, %45, %cst_16 {dimension_numbers = #tpu.dot_dimension_numbers<[1], [0], [0], [1], [0, 0, 1, 1], [], []>} : vector<8x128xbf16>, vector<128x128xbf16>, vector<8x128xf32> -> vector<8x128xf32>
    %48 = vector.extract_strided_slice %1 {offsets = [4, 0], sizes = [1, 128], strides = [1, 1]} : vector<8x128xf32> to vector<1x128xf32>
    %49 = vector.broadcast %48 : vector<1x128xf32> to vector<8x128xf32>
    %50 = arith.addf %47, %49 : vector<8x128xf32>
    %cst_17 = arith.constant 0.000000e+00 : f32
    %51 = vector.broadcast %cst_17 : f32 to vector<8x128xf32>
    %52 = arith.maximumf %50, %51 : vector<8x128xf32>
    %cst_18 = arith.constant 9.99999997E-7 : f32
    %53 = vector.broadcast %cst_18 : f32 to vector<8x128xf32>
    %54 = arith.addf %52, %53 : vector<8x128xf32>
    %55 = math.log %54 : vector<8x128xf32>
    %cst_19 = arith.constant 0.000000e+00 : f32
    %56 = vector.broadcast %cst_19 : f32 to vector<8x128xf32>
    %57 = arith.select %6, %55, %56 : vector<8x128xi1>, vector<8x128xf32>
    %58 = arith.select %4, %52, %57 : vector<8x128xi1>, vector<8x128xf32>
    %c640 = arith.constant 640 : index
    %c0_20 = arith.constant 0 : index
    %59 = vector.load %arg2[%c640, %c0_20] : memref<768x128xbf16, #tpu.memory_space<vmem>>, vector<128x128xbf16>
    %60 = arith.truncf %58 : vector<8x128xf32> to vector<8x128xbf16>
    %cst_21 = arith.constant dense<0.000000e+00> : vector<8x128xf32>
    %61 = tpu.matmul %60, %59, %cst_21 {dimension_numbers = #tpu.dot_dimension_numbers<[1], [0], [0], [1], [0, 0, 1, 1], [], []>} : vector<8x128xbf16>, vector<128x128xbf16>, vector<8x128xf32> -> vector<8x128xf32>
    %62 = vector.extract_strided_slice %1 {offsets = [5, 0], sizes = [1, 128], strides = [1, 1]} : vector<8x128xf32> to vector<1x128xf32>
    %63 = vector.broadcast %62 : vector<1x128xf32> to vector<8x128xf32>
    %64 = arith.addf %61, %63 : vector<8x128xf32>
    %65 = math.exp %64 : vector<8x128xf32>
    %cst_22 = arith.constant 0.000000e+00 : f32
    %66 = vector.broadcast %cst_22 : f32 to vector<8x128xf32>
    %67 = arith.select %10, %65, %66 : vector<8x128xi1>, vector<8x128xf32>
    %68 = arith.select %8, %64, %67 : vector<8x128xi1>, vector<8x128xf32>
    %c0_23 = arith.constant 0 : index
    %c0_24 = arith.constant 0 : index
    %69 = vector.load %arg4[%c0_23, %c0_24] : memref<8x128xf32, #tpu.memory_space<vmem>>, vector<8x128xf32>
    tpu.vector_store %arg4[%c0_23, %c0_24], %68 {strides = array<i32>} : memref<8x128xf32, #tpu.memory_space<vmem>>, vector<8x128xf32>,
    return
  }
  func.func @transform_0(%arg0: i32) -> (i32, i32) {
    %c0_i32 = arith.constant 0 : i32
    %c0_i32_0 = arith.constant 0 : i32
    return %arg0, %c0_i32 : i32, i32
  }
  func.func @transform_1(%arg0: i32) -> (i32, i32) {
    %c0_i32 = arith.constant 0 : i32
    %c0_i32_0 = arith.constant 0 : i32
    %c0_i32_1 = arith.constant 0 : i32
    return %c0_i32, %c0_i32_0 : i32, i32
  }
  func.func @transform_2(%arg0: i32) -> (i32, i32) {
    %c0_i32 = arith.constant 0 : i32
    %c0_i32_0 = arith.constant 0 : i32
    %c0_i32_1 = arith.constant 0 : i32
    return %c0_i32, %c0_i32_0 : i32, i32
  }
  func.func @transform_3(%arg0: i32) -> (i32, i32) {
    %c0_i32 = arith.constant 0 : i32
    %c0_i32_0 = arith.constant 0 : i32
    return %arg0, %c0_i32 : i32, i32
  }
}

module attributes {stable_mosaic.version = 11 : i64} {
  func.func @adapted_policy_kernel(%arg0: i32, %arg1: memref<8x16xf32, #tpu.memory_space<vmem>>, %arg2: memref<768x128xbf16, #tpu.memory_space<vmem>>, %arg3: memref<8x128xf32, #tpu.memory_space<vmem>>, %arg4: memref<8x128xf32, #tpu.memory_space<vmem>>) attributes {dimension_semantics = [#tpu.dimension_semantics<parallel>], iteration_bounds = array<i64: 1>, scalar_prefetch = 0 : i64, scratch_operands = 0 : i64, tpu.core_type = #tpu.core_type<tc>, window_params = [{transform_indices = @transform_0, window_bounds = array<i64: 8, 16>}, {pipeline_mode = #tpu.pipeline_mode<synchronous>, transform_indices = @transform_1, window_bounds = array<i64: 768, 128>}, {pipeline_mode = #tpu.pipeline_mode<synchronous>, transform_indices = @transform_2, window_bounds = array<i64: 8, 128>}, {transform_indices = @transform_3, window_bounds = array<i64: 8, 128>}]} {
    %c0 = arith.constant 0 : index
    %c0_0 = arith.constant 0 : index
    %0 = vector.load %arg1[%c0, %c0_0] : memref<8x16xf32, #tpu.memory_space<vmem>>, vector<8x16xf32>
    %c0_1 = arith.constant 0 : index
    %c0_2 = arith.constant 0 : index
    %1 = vector.load %arg3[%c0_1, %c0_2] : memref<8x128xf32, #tpu.memory_space<vmem>>, vector<8x128xf32>
    %2 = tpu.iota {dimensions = array<i32: 1>} : vector<8x128xi32>
    %c4_i32 = arith.constant 4 : i32
    %3 = vector.broadcast %c4_i32 : i32 to vector<8x128xi32>
    %4 = arith.cmpi slt, %2, %3 : vector<8x128xi32>
    %c8_i32 = arith.constant 8 : i32
    %5 = vector.broadcast %c8_i32 : i32 to vector<8x128xi32>
    %6 = arith.cmpi slt, %2, %5 : vector<8x128xi32>
    %c3_i32 = arith.constant 3 : i32
    %7 = vector.broadcast %c3_i32 : i32 to vector<8x128xi32>
    %8 = arith.cmpi slt, %2, %7 : vector<8x128xi32>
    %c6_i32 = arith.constant 6 : i32
    %9 = vector.broadcast %c6_i32 : i32 to vector<8x128xi32>
    %10 = arith.cmpi slt, %2, %9 : vector<8x128xi32>
    %c0_3 = arith.constant 0 : index
    %c0_4 = arith.constant 0 : index
    %11 = vector.load %arg2[%c0_3, %c0_4] : memref<768x128xbf16, #tpu.memory_space<vmem>>, vector<16x128xbf16>
    %12 = arith.truncf %0 : vector<8x16xf32> to vector<8x16xbf16>
    %cst = arith.constant dense<0.000000e+00> : vector<8x128xf32>
    %13 = tpu.matmul %12, %11, %cst {dimension_numbers = #tpu.dot_dimension_numbers<[1], [0], [0], [1], [0, 0, 1, 1], [], []>} : vector<8x16xbf16>, vector<16x128xbf16>, vector<8x128xf32> -> vector<8x128xf32>
    %14 = vector.extract_strided_slice %1 {offsets = [0, 0], sizes = [1, 128], strides = [1, 1]} : vector<8x128xf32> to vector<1x128xf32>
    %15 = vector.broadcast %14 : vector<1x128xf32> to vector<8x128xf32>
    %16 = arith.addf %13, %15 : vector<8x128xf32>
    %cst_5 = arith.constant 0.000000e+00 : f32
    %17 = vector.broadcast %cst_5 : f32 to vector<8x128xf32>
    %18 = arith.maximumf %16, %17 : vector<8x128xf32>
    %c128 = arith.constant 128 : index
    %c0_6 = arith.constant 0 : index
    %19 = vector.load %arg2[%c128, %c0_6] : memref<768x128xbf16, #tpu.memory_space<vmem>>, vector<128x128xbf16>
    %20 = arith.truncf %18 : vector<8x128xf32> to vector<8x128xbf16>
    %cst_7 = arith.constant dense<0.000000e+00> : vector<8x128xf32>
    %21 = tpu.matmul %20, %19, %cst_7 {dimension_numbers = #tpu.dot_dimension_numbers<[1], [0], [0], [1], [0, 0, 1, 1], [], []>} : vector<8x128xbf16>, vector<128x128xbf16>, vector<8x128xf32> -> vector<8x128xf32>
    %22 = vector.extract_strided_slice %1 {offsets = [1, 0], sizes = [1, 128], strides = [1, 1]} : vector<8x128xf32> to vector<1x128xf32>
    %23 = vector.broadcast %22 : vector<1x128xf32> to vector<8x128xf32>
    %24 = arith.addf %21, %23 : vector<8x128xf32>
    %cst_8 = arith.constant 0.000000e+00 : f32
    %25 = vector.broadcast %cst_8 : f32 to vector<8x128xf32>
    %26 = arith.maximumf %24, %25 : vector<8x128xf32>
    %c256 = arith.constant 256 : index
    %c0_9 = arith.constant 0 : index
    %27 = vector.load %arg2[%c256, %c0_9] : memref<768x128xbf16, #tpu.memory_space<vmem>>, vector<128x128xbf16>
    %28 = arith.truncf %26 : vector<8x128xf32> to vector<8x128xbf16>
    %cst_10 = arith.constant dense<0.000000e+00> : vector<8x128xf32>
    %29 = tpu.matmul %28, %27, %cst_10 {dimension_numbers = #tpu.dot_dimension_numbers<[1], [0], [0], [1], [0, 0, 1, 1], [], []>} : vector<8x128xbf16>, vector<128x128xbf16>, vector<8x128xf32> -> vector<8x128xf32>
    %30 = vector.extract_strided_slice %1 {offsets = [2, 0], sizes = [1, 128], strides = [1, 1]} : vector<8x128xf32> to vector<1x128xf32>
    %31 = vector.broadcast %30 : vector<1x128xf32> to vector<8x128xf32>
    %32 = arith.addf %29, %31 : vector<8x128xf32>
    %cst_11 = arith.constant 0.000000e+00 : f32
    %33 = vector.broadcast %cst_11 : f32 to vector<8x128xf32>
    %34 = arith.maximumf %32, %33 : vector<8x128xf32>
    %c384 = arith.constant 384 : index
    %c0_12 = arith.constant 0 : index
    %35 = vector.load %arg2[%c384, %c0_12] : memref<768x128xbf16, #tpu.memory_space<vmem>>, vector<128x128xbf16>
    %36 = arith.truncf %34 : vector<8x128xf32> to vector<8x128xbf16>
    %cst_13 = arith.constant dense<0.000000e+00> : vector<8x128xf32>
    %37 = tpu.matmul %36, %35, %cst_13 {dimension_numbers = #tpu.dot_dimension_numbers<[1], [0], [0], [1], [0, 0, 1, 1], [], []>} : vector<8x128xbf16>, vector<128x128xbf16>, vector<8x128xf32> -> vector<8x128xf32>
    %38 = vector.extract_strided_slice %1 {offsets = [3, 0], sizes = [1, 128], strides = [1, 1]} : vector<8x128xf32> to vector<1x128xf32>
    %39 = vector.broadcast %38 : vector<1x128xf32> to vector<8x128xf32>
    %40 = arith.addf %37, %39 : vector<8x128xf32>
    %41 = math.exp %40 : vector<8x128xf32>
    %cst_14 = arith.constant 0.000000e+00 : f32
    %42 = vector.broadcast %cst_14 : f32 to vector<8x128xf32>
    %43 = arith.select %6, %41, %42 : vector<8x128xi1>, vector<8x128xf32>
    %44 = arith.select %4, %40, %43 : vector<8x128xi1>, vector<8x128xf32>
    %c512 = arith.constant 512 : index
    %c0_15 = arith.constant 0 : index
    %45 = vector.load %arg2[%c512, %c0_15] : memref<768x128xbf16, #tpu.memory_space<vmem>>, vector<128x128xbf16>
    %46 = arith.truncf %44 : vector<8x128xf32> to vector<8x128xbf16>
    %cst_16 = arith.constant dense<0.000000e+00> : vector<8x128xf32>
    %47 = tpu.matmul %46, %45, %cst_16 {dimension_numbers = #tpu.dot_dimension_numbers<[1], [0], [0], [1], [0, 0, 1, 1], [], []>} : vector<8x128xbf16>, vector<128x128xbf16>, vector<8x128xf32> -> vector<8x128xf32>
    %48 = vector.extract_strided_slice %1 {offsets = [4, 0], sizes = [1, 128], strides = [1, 1]} : vector<8x128xf32> to vector<1x128xf32>
    %49 = vector.broadcast %48 : vector<1x128xf32> to vector<8x128xf32>
    %50 = arith.addf %47, %49 : vector<8x128xf32>
    %cst_17 = arith.constant 0.000000e+00 : f32
    %51 = vector.broadcast %cst_17 : f32 to vector<8x128xf32>
    %52 = arith.maximumf %50, %51 : vector<8x128xf32>
    %cst_18 = arith.constant 9.99999997E-7 : f32
    %53 = vector.broadcast %cst_18 : f32 to vector<8x128xf32>
    %54 = arith.addf %52, %53 : vector<8x128xf32>
    %55 = math.log %54 : vector<8x128xf32>
    %cst_19 = arith.constant 0.000000e+00 : f32
    %56 = vector.broadcast %cst_19 : f32 to vector<8x128xf32>
    %57 = arith.select %6, %55, %56 : vector<8x128xi1>, vector<8x128xf32>
    %58 = arith.select %4, %52, %57 : vector<8x128xi1>, vector<8x128xf32>
    %c640 = arith.constant 640 : index
    %c0_20 = arith.constant 0 : index
    %59 = vector.load %arg2[%c640, %c0_20] : memref<768x128xbf16, #tpu.memory_space<vmem>>, vector<128x128xbf16>
    %60 = arith.truncf %58 : vector<8x128xf32> to vector<8x128xbf16>
    %cst_21 = arith.constant dense<0.000000e+00> : vector<8x128xf32>
    %61 = tpu.matmul %60, %59, %cst_21 {dimension_numbers = #tpu.dot_dimension_numbers<[1], [0], [0], [1], [0, 0, 1, 1], [], []>} : vector<8x128xbf16>, vector<128x128xbf16>, vector<8x128xf32> -> vector<8x128xf32>
    %62 = vector.extract_strided_slice %1 {offsets = [5, 0], sizes = [1, 128], strides = [1, 1]} : vector<8x128xf32> to vector<1x128xf32>
    %63 = vector.broadcast %62 : vector<1x128xf32> to vector<8x128xf32>
    %64 = arith.addf %61, %63 : vector<8x128xf32>
    %65 = math.exp %64 : vector<8x128xf32>
    %cst_22 = arith.constant 0.000000e+00 : f32
    %66 = vector.broadcast %cst_22 : f32 to vector<8x128xf32>
    %67 = arith.select %10, %65, %66 : vector<8x128xi1>, vector<8x128xf32>
    %68 = arith.select %8, %64, %67 : vector<8x128xi1>, vector<8x128xf32>
    %c0_23 = arith.constant 0 : index
    %c0_24 = arith.constant 0 : index
    %69 = vector.load %arg4[%c0_23, %c0_24] : memref<8x128xf32, #tpu.memory_space<vmem>>, vector<8x128xf32>
    tpu.vector_store %arg4[%c0_23, %c0_24], %68 {strides = array<i32>} : memref<8x128xf32, #tpu.memory_space<vmem>>, vector<8x128xf32>,
    return
  }
  func.func @transform_0(%arg0: i32) -> (i32, i32) {
    %c0_i32 = arith.constant 0 : i32
    %c0_i32_0 = arith.constant 0 : i32
    return %arg0, %c0_i32 : i32, i32
  }
  func.func @transform_1(%arg0: i32) -> (i32, i32) {
    %c0_i32 = arith.constant 0 : i32
    %c0_i32_0 = arith.constant 0 : i32
    %c0_i32_1 = arith.constant 0 : i32
    return %c0_i32, %c0_i32_0 : i32, i32
  }
  func.func @transform_2(%arg0: i32) -> (i32, i32) {
    %c0_i32 = arith.constant 0 : i32
    %c0_i32_0 = arith.constant 0 : i32
    %c0_i32_1 = arith.constant 0 : i32
    return %c0_i32, %c0_i32_0 : i32, i32
  }
  func.func @transform_3(%arg0: i32) -> (i32, i32) {
    %c0_i32 = arith.constant 0 : i32
    %c0_i32_0 = arith.constant 0 : i32
    return %arg0, %c0_i32 : i32, i32
  }
}

</mosaic_0001>

<bundles_post_ra>
// kernel: tpu_custom_call.1
= control target key start
LH: loop header
LB: loop body
LE: loop exit
PB: predicated region body
PF: predicated region fallthrough
CT: control target
= control target key end

     0   :  { %8 = vsyncpa [#allocation3], 0  ;;  %s1192_s0 = inlined_call_operand.hbm [shape: f32[8,16], index: 0, kind: input, shape index: {}]   ;;  %s1193_s1 = inlined_call_operand.hbm [shape: bf16[768,128], index: 1, kind: input, shape index: {}]   ;;  %s1194_s2 = inlined_call_operand.hbm [shape: f32[8,128], index: 2, kind: input, shape index: {}]   ;;  %s1195_s3 = inlined_call_operand.hbm [shape: f32[8,128], index: 3, kind: output, shape index: {}]  }
   0x1   :  { %9 = vsyncpa [#allocation6], 0 }
   0x2   :  { %10 = vsyncpa [#allocation4], 0  ;;  %s1041_s12 = smov [#allocation5]   ;;  %s947_s16 = scalar_lea.hbm %s1193_s1, 6144 }
   0x3   :  { %s26_s13 = sshll.u32 %s1041_s12, 4  ;;  %p948_p0 = scmp.ne.s32.totalorder %s1193_s1, %s947_s16  ;;  %s27_s13 = int_to_ptr.vmem [resolvable:$true] %s26_s13 }
   0x4   :  { %p951_p1 = scmp.lt.u32.totalorder %s947_s16, %s1193_s1 }
   0x6   :  { %p953_p2 = pnand %p951_p1, %p948_p0 }
   0x8   :  { %956 = shalt.err (!%p953_p2)
}
   0x9   :  { %s957_s21 = scalar_lea.vmem %s27_s13, 6144  ;;  %p962_p4 = scmp.lt.s32.totalorder %s27_s13, %s27_s13 }
   0xa   :  { %p958_p3 = scmp.ne.s32.totalorder %s27_s13, %s957_s21  ;;  %p963_p5 = scmp.lt.s32.totalorder %s957_s21, %s957_s21 }
   0xc   :  { %p964_p6 = por %p963_p5, %p962_p4 }
   0xe   :  { %p965_p7 = pnand %p964_p6, %p958_p3 }
  0x10   :  { %968 = shalt.err (!%p965_p7)
}
  0x11   :  { %s1042_s22 = smov 64   ;;  %s1043_s23 = smov 4  }
  0x12   :  { %32 = dma.hbm_to_vmem [thread:$0]  %s1193_s1, 6144, %s27_s13, [#allocation6], %s1042_s22, %s1042_s22, %s1043_s23  }
  0x13   :  { %s1044_s26 = smov [#allocation2]   ;;  %s1045_s28 = smov [#allocation7]  }
  0x14   :  { %s17_s27 = sshll.u32 %s1044_s26, 4  ;;  %s39_s29 = sshll.u32 %s1045_s28, 4  ;;  %s18_s27 = int_to_ptr.vmem [resolvable:$true] %s17_s27  ;;  %s40_s29 = int_to_ptr.vmem [resolvable:$true] %s39_s29 }
  0x15   :  { %s969_s5 = scalar_lea.hbm %s1192_s0, 128 }
  0x16   :  { %p970_p8 = scmp.ne.s32.totalorder %s1192_s0, %s969_s5  ;;  %p973_p9 = scmp.lt.u32.totalorder %s969_s5, %s1192_s0 }
  0x18   :  { %p975_p10 = pnand %p973_p9, %p970_p8 }
  0x1a   :  { %978 = shalt.err (!%p975_p10)
}
  0x1b   :  { %s979_s1 = scalar_lea.vmem %s18_s27, 128  ;;  %p984_p12 = scmp.lt.s32.totalorder %s18_s27, %s18_s27 }
  0x1c   :  { %p980_p11 = scmp.ne.s32.totalorder %s18_s27, %s979_s1  ;;  %p985_p13 = scmp.lt.s32.totalorder %s979_s1, %s979_s1 }
  0x1e   :  { %p986_p0 = por %p985_p13, %p984_p12 }
  0x20   :  { %p987_p1 = pnand %p986_p0, %p980_p11 }
  0x22   :  { %990 = shalt.err (!%p987_p1)
}
  0x23   :  { %20 = dma.hbm_to_vmem [thread:$0]  %s1192_s0, 128, %s18_s27, [#allocation3]  }
  0x24   :  { %s991_s14 = scalar_lea.hbm %s1194_s2, 128 }
  0x25   :  { %p992_p2 = scmp.ne.s32.totalorder %s1194_s2, %s991_s14  ;;  %p995_p3 = scmp.lt.u32.totalorder %s991_s14, %s1194_s2 }
  0x27   :  { %p997_p4 = pnand %p995_p3, %p992_p2 }
  0x29   :  { %1000 = shalt.err (!%p997_p4)
}
  0x2a   :  { %s1001_s19 = scalar_lea.vmem %s40_s29, 128  ;;  %p1006_p6 = scmp.lt.s32.totalorder %s40_s29, %s40_s29 }
  0x2b   :  { %p1002_p5 = scmp.ne.s32.totalorder %s40_s29, %s1001_s19  ;;  %p1007_p7 = scmp.lt.s32.totalorder %s1001_s19, %s1001_s19 }
  0x2d   :  { %p1008_p8 = por %p1007_p7, %p1006_p6 }
  0x2f   :  { %p1009_p9 = pnand %p1008_p8, %p1002_p5 }
  0x31   :  { %1012 = shalt.err (!%p1009_p9)
}
  0x32   :  { %42 = dma.hbm_to_vmem [thread:$0]  %s1194_s2, 128, %s40_s29, [#allocation6]  }
  0x33   :  { %1035 = dma.done.wait [#allocation3], 128  }
  0x34   :  { %1036 = vsyncadd [#allocation3], 4294967168 }
  0x35   :  { %1037 = dma.done.wait [#allocation6], 6272  }
  0x36   :  { %1038 = vsyncadd [#allocation6], 4294961024  ;;  %v1046_v0 = vmov 0.0   ;;  %vm1047_vm0 = vmmov 0   ;;  %v900_v1 = vld [vmem:[#allocation5] sm:$0xff]   ;;  %v53_v2 = vld [vmem:[#allocation2] sm:$0xff]  ;;  %v55_v18 = vlaneseq }
  0x37   :  { %786 = vmatprep.subr.bf16.mxu0 %v1046_v0  ;;  %788 = vmatprep.mubr.msk.bf16.mxu0 %vm1047_vm0, %v1046_v0  ;;  %v63_v3 = vpack.c.bf16 %v53_v2, %v53_v2  ;;  %vm74_vm1 = vcmask 130048   ;;  %v901_v4 = vld [vmem:[#allocation5 + $0x40] sm:$0xff]   ;;  %v902_v5 = vld [vmem:[#allocation5 + $0x48] sm:$0xff]   ;;  %v903_v6 = vld [vmem:[#allocation5 + $0x50] sm:$0xff]   ;;  %s1048_s2 = smov [#allocation8]  }
  0x38   :  { %792 = vmatprep.subr.bf16.mxu1 %v1046_v0  ;;  %808 = vmatprep.mubr.msk.bf16.mxu1 %vm1047_vm0, %v1046_v0  ;;  %v904_v7 = vld [vmem:[#allocation5 + $0x58] sm:$0xff]   ;;  %v905_v8 = vld [vmem:[#allocation5 + $0x60] sm:$0xff]   ;;  %v906_v9 = vld [vmem:[#allocation5 + $0x68] sm:$0xff]   ;;  %v1129_v19 = vshrl.u32 %v55_v18, 7  ;;  %s687_s21 = sshll.u32 %s1048_s2, 4  ;;  %s688_s21 = int_to_ptr.vmem [resolvable:$true] %s687_s21 }
  0x39   :  { %787 = vmatpush3.bf16.msra.mxu0 %v900_v1  ;;  %793 = vmatpush3.bf16.msra.mxu1 %v901_v4  ;;  %v907_v10 = vld [vmem:[#allocation5 + $0x70] sm:$0xff]   ;;  %v908_v11 = vld [vmem:[#allocation5 + $0x78] sm:$0xff]   ;;  %v909_v12 = vld [vmem:[#allocation5 + $0x80] sm:$0xff]   ;;  %s1013_s22 = scalar_lea.vmem %s688_s21, 128  ;;  %p1018_p11 = scmp.lt.s32.totalorder %s688_s21, %s688_s21 }
  0x3a   :  { %812 = vmatprep.subr.bf16.mxu0 %v1046_v0  ;;  %794 = vmatprep.subr.bf16.mxu1 %v1046_v0  ;;  %v910_v13 = vld [vmem:[#allocation5 + $0x88] sm:$0xff]   ;;  %v911_v14 = vld [vmem:[#allocation5 + $0x90] sm:$0xff]   ;;  %v912_v15 = vld [vmem:[#allocation5 + $0x98] sm:$0xff]   ;;  %v66_v20 = vsub.s32 0, %v1129_v19  ;;  %v138_v38 = vsub.s32 1, %v1129_v19  ;;  %v248_v52 = vsub.s32 2, %v1129_v19  ;;  %p1014_p10 = scmp.ne.s32.totalorder %s688_s21, %s1013_s22  ;;  %p1019_p12 = scmp.lt.s32.totalorder %s1013_s22, %s1013_s22 }
  0x3b   :  { %v913_v16 = vld [vmem:[#allocation5 + $0xa0] sm:$0xff]   ;;  %v914_v17 = vld [vmem:[#allocation5 + $0xa8] sm:$0xff]   ;;  %v915_v30 = vld [vmem:[#allocation5 + $0xb0] sm:$0xff]  }
  0x3c   :  { %789 = vmatmul.mubr.msk.bf16.vlgmr.msra.gmra.mrb[0].mxu0 %vm74_vm1, %v63_v3  ;;  %v1132_v21 = vld [vmem:[#allocation7] sm:$0xff]  ;;  %v916_v31 = vld [vmem:[#allocation5 + $0xb8] sm:$0xff]   ;;  %v918_v33 = vld [vmem:[#allocation5 + $0xc8] sm:$0xff]   ;;  %p1020_p13 = por %p1019_p12, %p1018_p11 }
  0x3d   :  { %828 = vmatprep.mubr.msk.bf16.mxu0 %vm1047_vm0, %v1046_v0  ;;  %795 = vmatpush3.bf16.msra.mxu1 %v902_v5  ;;  %v67_v22 = vrot.slane %v1132_v21, %v66_v20  ;;  %v917_v32 = vld [vmem:[#allocation5 + $0xc0] sm:$0xff]   ;;  %v919_v34 = vld [vmem:[#allocation5 + $0xd0] sm:$0xff]   ;;  %v920_v35 = vld [vmem:[#allocation5 + $0xd8] sm:$0xff]   ;;  %v139_v39 = vrot.slane %v1132_v21, %v138_v38  ;;  %v249_v53 = vrot.slane %v1132_v21, %v248_v52  ;;  %v358_v5 = vsub.s32 3, %v1129_v19 }
  0x3e   :  { %796 = vmatprep.subr.bf16.mxu1 %v1046_v0  ;;  %813 = vmatpush3.bf16.msra.mxu0 %v909_v12  ;;  %v921_v36 = vld [vmem:[#allocation5 + $0xe0] sm:$0xff]   ;;  %v922_v37 = vld [vmem:[#allocation5 + $0xe8] sm:$0xff]   ;;  %v923_v47 = vld [vmem:[#allocation5 + $0xf0] sm:$0xff]   ;;  %p1021_p0 = pnand %p1020_p13, %p1014_p10 }
  0x3f   :  { %814 = vmatprep.subr.bf16.mxu0 %v1046_v0  ;;  %v924_v48 = vld [vmem:[#allocation5 + $0xf8] sm:$0xff]   ;;  %v925_v49 = vld [vmem:[#allocation5 + $0x100] sm:$0xff]   ;;  %v926_v50 = vld [vmem:[#allocation5 + $0x108] sm:$0xff]  }
  0x40   :  { %v927_v51 = vld [vmem:[#allocation5 + $0x110] sm:$0xff]   ;;  %v928_v61 = vld [vmem:[#allocation5 + $0x118] sm:$0xff]   ;;  %v929_v62 = vld [vmem:[#allocation5 + $0x120] sm:$0xff]  }
  0x41   :  { %797 = vmatpush3.bf16.msra.mxu1 %v903_v6  ;;  %v930_v63 = vld [vmem:[#allocation5 + $0x128] sm:$0xff]   ;;  %v931_v1 = vld [vmem:[#allocation5 + $0x130] sm:$0xff]   ;;  %v932_v2 = vld [vmem:[#allocation5 + $0x138] sm:$0xff]   ;;  %v359_v6 = vrot.slane %v1132_v21, %v358_v5 }
  0x42   :  { %798 = vmatprep.subr.bf16.mxu1 %v1046_v0  ;;  %815 = vmatpush3.bf16.msra.mxu0 %v910_v13  ;;  %v933_v3 = vld [vmem:[#allocation5 + $0x140] sm:$0xff]   ;;  %v934_v4 = vld [vmem:[#allocation5 + $0x148] sm:$0xff]   ;;  %v56_v13 = vand.u32 127, %v55_v18  ;;  %v935_v20 = vld [vmem:[#allocation5 + $0x150] sm:$0xff]  }
  0x43   :  { %816 = vmatprep.subr.bf16.mxu0 %v1046_v0  ;;  %v938_v18 = vld [vmem:[#allocation5 + $0x168] sm:$0xff]  }
  0x44   :  { %vm58_vm2 = vcmp.lt.s32.totalorder %v56_v13, 8  ;;  %vm57_vm3 = vcmp.lt.s32.totalorder %v56_v13, 4  ;;  %vm60_vm4 = vcmp.lt.s32.totalorder %v56_v13, 6  ;;  %vm59_vm5 = vcmp.lt.s32.totalorder %v56_v13, 3 }
  0x45   :  { %799 = vmatpush3.bf16.msra.mxu1 %v904_v7 }
  0x46   :  { %800 = vmatprep.subr.bf16.mxu1 %v1046_v0  ;;  %817 = vmatpush3.bf16.msra.mxu0 %v911_v14 }
  0x47   :  { %818 = vmatprep.subr.bf16.mxu0 %v1046_v0 }
  0x49   :  { %801 = vmatpush3.bf16.msra.mxu1 %v905_v8 }
  0x4a   :  { %802 = vmatprep.subr.bf16.mxu1 %v1046_v0  ;;  %819 = vmatpush3.bf16.msra.mxu0 %v912_v15 }
  0x4b   :  { %820 = vmatprep.subr.bf16.mxu0 %v1046_v0 }
  0x4d   :  { %803 = vmatpush3.bf16.msra.mxu1 %v906_v9 }
  0x4e   :  { %804 = vmatprep.subr.bf16.mxu1 %v1046_v0  ;;  %821 = vmatpush3.bf16.msra.mxu0 %v913_v16 }
  0x4f   :  { %822 = vmatprep.subr.bf16.mxu0 %v1046_v0 }
  0x51   :  { %805 = vmatpush3.bf16.msra.mxu1 %v907_v10 }
  0x52   :  { %806 = vmatprep.subr.bf16.mxu1 %v1046_v0  ;;  %823 = vmatpush3.bf16.msra.mxu0 %v914_v17 }
  0x53   :  { %824 = vmatprep.subr.bf16.mxu0 %v1046_v0 }
  0x55   :  { %807 = vmatpush3.bf16.msra.mxu1 %v908_v11 }
  0x56   :  { %832 = vmatprep.subr.bf16.mxu1 %v1046_v0  ;;  %825 = vmatpush3.bf16.msra.mxu0 %v915_v30 }
  0x57   :  { %826 = vmatprep.subr.bf16.mxu0 %v1046_v0 }
  0x5a   :  { %827 = vmatpush3.bf16.msra.mxu0 %v916_v31 }
  0x5b   :  { %852 = vmatprep.subr.bf16.mxu0 %v1046_v0 }
 0x10f   :  { %v112_v23 = vpop.f32.mrb[0].mxu0 }
 0x110   :  { %v113_v24 = vadd.f32 %v112_v23, %v67_v22  ;;  %v790_v25 = vpop.f32.mrb[1].mxu0  ;;  %v936_v22 = vld [vmem:[#allocation5 + $0x158] sm:$0xff]   ;;  %v937_v23 = vld [vmem:[#allocation5 + $0x160] sm:$0xff]  }
 0x111   :  { %v115_v26 = vpop.f32.mrb[2].mxu0  ;;  %v940_v25 = vld [vmem:[#allocation5 + $0x178] sm:$0xff]  }
 0x112   :  { %v118_v27 = vmax.f32 %v113_v24, 0.0  ;;  %v791_v28 = vpop.f32.mrb[3].mxu0  ;;  %v939_v24 = vld [vmem:[#allocation5 + $0x170] sm:$0xff]   ;;  %v471_v26 = vsub.s32 4, %v1129_v19 }
 0x114   :  { %v135_v29 = vpack.c.bf16 %v118_v27, %v118_v27  ;;  %v472_v27 = vrot.slane %v1132_v21, %v471_v26 }
 0x116   :  { %809 = vmatmul.mubr.bf16.vlgmr.msra.gmra.mrb[0].mxu1 %v135_v29 }
 0x117   :  { %848 = vmatprep.mubr.msk.bf16.mxu1 %vm1047_vm0, %v1046_v0  ;;  %833 = vmatpush3.bf16.msra.mxu1 %v917_v32 }
 0x118   :  { %834 = vmatprep.subr.bf16.mxu1 %v1046_v0 }
 0x11b   :  { %835 = vmatpush3.bf16.msra.mxu1 %v918_v33 }
 0x11c   :  { %836 = vmatprep.subr.bf16.mxu1 %v1046_v0 }
 0x11f   :  { %837 = vmatpush3.bf16.msra.mxu1 %v919_v34 }
 0x120   :  { %838 = vmatprep.subr.bf16.mxu1 %v1046_v0 }
 0x123   :  { %839 = vmatpush3.bf16.msra.mxu1 %v920_v35 }
 0x124   :  { %840 = vmatprep.subr.bf16.mxu1 %v1046_v0 }
 0x127   :  { %841 = vmatpush3.bf16.msra.mxu1 %v921_v36 }
 0x128   :  { %842 = vmatprep.subr.bf16.mxu1 %v1046_v0 }
 0x12b   :  { %843 = vmatpush3.bf16.msra.mxu1 %v922_v37 }
 0x12c   :  { %844 = vmatprep.subr.bf16.mxu1 %v1046_v0 }
 0x12f   :  { %845 = vmatpush3.bf16.msra.mxu1 %v923_v47 }
 0x130   :  { %846 = vmatprep.subr.bf16.mxu1 %v1046_v0 }
 0x133   :  { %847 = vmatpush3.bf16.msra.mxu1 %v924_v48 }
 0x134   :  { %872 = vmatprep.subr.bf16.mxu1 %v1046_v0 }
 0x1e9   :  { %v222_v40 = vpop.f32.mrb[0].mxu1 }
 0x1ea   :  { %v223_v41 = vadd.f32 %v222_v40, %v139_v39  ;;  %v810_v42 = vpop.f32.mrb[1].mxu1  ;;  %v586_v39 = vsub.s32 5, %v1129_v19 }
 0x1eb   :  { %v225_v43 = vpop.f32.mrb[2].mxu1 }
 0x1ec   :  { %v228_v44 = vmax.f32 %v223_v41, 0.0  ;;  %v811_v45 = vpop.f32.mrb[3].mxu1  ;;  %v587_v40 = vrot.slane %v1132_v21, %v586_v39 }
 0x1ee   :  { %v245_v46 = vpack.c.bf16 %v228_v44, %v228_v44 }
 0x1f0   :  { %829 = vmatmul.mubr.bf16.vlgmr.msra.gmra.mrb[4].mxu0 %v245_v46 }
 0x1f1   :  { %868 = vmatprep.mubr.msk.bf16.mxu0 %vm1047_vm0, %v1046_v0  ;;  %853 = vmatpush3.bf16.msra.mxu0 %v925_v49 }
 0x1f2   :  { %854 = vmatprep.subr.bf16.mxu0 %v1046_v0 }
 0x1f5   :  { %855 = vmatpush3.bf16.msra.mxu0 %v926_v50 }
 0x1f6   :  { %856 = vmatprep.subr.bf16.mxu0 %v1046_v0 }
 0x1f9   :  { %857 = vmatpush3.bf16.msra.mxu0 %v927_v51 }
 0x1fa   :  { %858 = vmatprep.subr.bf16.mxu0 %v1046_v0 }
 0x1fd   :  { %859 = vmatpush3.bf16.msra.mxu0 %v928_v61 }
 0x1fe   :  { %860 = vmatprep.subr.bf16.mxu0 %v1046_v0 }
 0x201   :  { %861 = vmatpush3.bf16.msra.mxu0 %v929_v62 }
 0x202   :  { %862 = vmatprep.subr.bf16.mxu0 %v1046_v0 }
 0x205   :  { %863 = vmatpush3.bf16.msra.mxu0 %v930_v63 }
 0x206   :  { %864 = vmatprep.subr.bf16.mxu0 %v1046_v0 }
 0x209   :  { %865 = vmatpush3.bf16.msra.mxu0 %v931_v1 }
 0x20a   :  { %866 = vmatprep.subr.bf16.mxu0 %v1046_v0 }
 0x20d   :  { %867 = vmatpush3.bf16.msra.mxu0 %v932_v2 }
 0x2c3   :  { %v332_v54 = vpop.f32.mrb[4].mxu0 }
 0x2c4   :  { %v333_v55 = vadd.f32 %v332_v54, %v249_v53  ;;  %v830_v56 = vpop.f32.mrb[5].mxu0 }
 0x2c5   :  { %v335_v57 = vpop.f32.mrb[6].mxu0 }
 0x2c6   :  { %v338_v58 = vmax.f32 %v333_v55, 0.0  ;;  %v831_v59 = vpop.f32.mrb[7].mxu0 }
 0x2c8   :  { %v355_v60 = vpack.c.bf16 %v338_v58, %v338_v58 }
 0x2ca   :  { %849 = vmatmul.mubr.bf16.vlgmr.msra.gmra.mrb[4].mxu1 %v355_v60 }
 0x2cb   :  { %888 = vmatprep.mubr.msk.bf16.mxu1 %vm1047_vm0, %v1046_v0  ;;  %873 = vmatpush3.bf16.msra.mxu1 %v933_v3 }
 0x2cc   :  { %874 = vmatprep.subr.bf16.mxu1 %v1046_v0 }
 0x2cf   :  { %875 = vmatpush3.bf16.msra.mxu1 %v934_v4 }
 0x2d0   :  { %876 = vmatprep.subr.bf16.mxu1 %v1046_v0 }
 0x2d3   :  { %877 = vmatpush3.bf16.msra.mxu1 %v935_v20 }
 0x2d4   :  { %878 = vmatprep.subr.bf16.mxu1 %v1046_v0 }
 0x2d7   :  { %879 = vmatpush3.bf16.msra.mxu1 %v936_v22 }
 0x2d8   :  { %880 = vmatprep.subr.bf16.mxu1 %v1046_v0 }
 0x2db   :  { %881 = vmatpush3.bf16.msra.mxu1 %v937_v23 }
 0x2dc   :  { %882 = vmatprep.subr.bf16.mxu1 %v1046_v0 }
 0x2df   :  { %883 = vmatpush3.bf16.msra.mxu1 %v938_v18 }
 0x2e0   :  { %884 = vmatprep.subr.bf16.mxu1 %v1046_v0 }
 0x2e3   :  { %885 = vmatpush3.bf16.msra.mxu1 %v939_v24 }
 0x2e4   :  { %886 = vmatprep.subr.bf16.mxu1 %v1046_v0 }
 0x2e7   :  { %887 = vmatpush3.bf16.msra.mxu1 %v940_v25 }
 0x39d   :  { %v442_v7 = vpop.f32.mrb[4].mxu1 }
 0x39e   :  { %v443_v8 = vadd.f32 %v442_v7, %v359_v6  ;;  %v850_v9 = vpop.f32.mrb[5].mxu1 }
 0x39f   :  { %v445_v10 = vpop.f32.mrb[6].mxu1 }
 0x3a0   :  { %v448_v11 = vmul.f32 1.442695, %v443_v8  ;;  %v851_v12 = vpop.f32.mrb[7].mxu1 }
 0x3a2   :  { %941 = vpow2.f32 %v448_v11 }
 0x3ac   :  { %v942_v14 = vpop.eup %941 }
 0x3ad   :  { %v450_v15 = vsel %vm58_vm2, %v942_v14, 0.0 }
 0x3ae   :  { %v451_v16 = vsel %vm57_vm3, %v443_v8, %v450_v15 }
 0x3af   :  { %v468_v17 = vpack.c.bf16 %v451_v16, %v451_v16 }
 0x3b1   :  { %869 = vmatmul.mubr.bf16.vlgmr.msra.gmra.mrb[8].mxu0 %v468_v17 }
 0x484   :  { %v555_v28 = vpop.f32.mrb[8].mxu0 }
 0x485   :  { %v556_v29 = vadd.f32 %v555_v28, %v472_v27  ;;  %v870_v30 = vpop.f32.mrb[9].mxu0 }
 0x486   :  { %v558_v31 = vpop.f32.mrb[10].mxu0 }
 0x487   :  { %v561_v32 = vmax.f32 %v556_v29, 0.0  ;;  %v871_v33 = vpop.f32.mrb[11].mxu0 }
 0x489   :  { %v562_v34 = vadd.f32 1e-06, %v561_v32 }
 0x48b   :  { %943 = vlog2.f32 %v562_v34 }
 0x495   :  { %v944_v35 = vpop.eup %943 }
 0x496   :  { %v564_v36 = vmul.f32 0.6931472, %v944_v35 }
 0x498   :  { %v565_v37 = vsel %vm58_vm2, %v564_v36, 0.0 }
 0x499   :  { %v566_v0 = vsel %vm57_vm3, %v561_v32, %v565_v37 }
 0x49a   :  { %v583_v38 = vpack.c.bf16 %v566_v0, %v566_v0 }
 0x49c   :  { %889 = vmatmul.mubr.bf16.vlgmr.msra.gmra.mrb[8].mxu1 %v583_v38 }
 0x56f   :  { %v670_v41 = vpop.f32.mrb[8].mxu1 }
 0x570   :  { %v671_v42 = vadd.f32 %v670_v41, %v587_v40  ;;  %v890_v43 = vpop.f32.mrb[9].mxu1 }
 0x571   :  { %v673_v44 = vpop.f32.mrb[10].mxu1 }
 0x572   :  { %v676_v45 = vmul.f32 1.442695, %v671_v42  ;;  %v891_v46 = vpop.f32.mrb[11].mxu1 }
 0x574   :  { %945 = vpow2.f32 %v676_v45 }
 0x57e   :  { %v946_v47 = vpop.eup %945 }
 0x57f   :  { %v678_v48 = vsel %vm60_vm4, %v946_v47, 0.0 }
 0x580   :  { %v679_v49 = vsel %vm59_vm5, %v671_v42, %v678_v48 }
 0x581   :  { %680 = vst [vmem:[#allocation8] sm:$0xff] %v679_v49 }
 0x582   :  { %1024 = shalt.err (!%p1021_p0)
}
 0x583   :  { %s1025_s25 = scalar_lea.hbm %s1195_s3, 128 }
 0x584   :  { %p1026_p1 = scmp.ne.s32.totalorder %s1195_s3, %s1025_s25  ;;  %p1029_p2 = scmp.lt.u32.totalorder %s1025_s25, %s1195_s3 }
 0x586   :  { %p1031_p3 = pnand %p1029_p2, %p1026_p1 }
 0x588   :  { %1034 = shalt.err (!%p1031_p3)
}
 0x589   :  { %690 = dma.vmem_to_hbm [thread:$0]  %s688_s21, 128, %s1195_s3, [#allocation4]  }
 0x58a   :  { %1039 = dma.done.wait [#allocation4], 128  }
 0x58b   :  { %1040 = vsyncadd [#allocation4], 4294967168 }
 0x58c   :  { %694 = vsyncpa [#allocation3], 1 }
 0x58d   :  { %695 = vsyncpa [#allocation6], 1 }
 0x58e   :  { %696 = vsyncpa [#allocation4], 1 }

// kernel: tpu_custom_call.1
= control target key start
LH: loop header
LB: loop body
LE: loop exit
PB: predicated region body
PF: predicated region fallthrough
CT: control target
= control target key end

     0   :  { %8 = vsyncpa [#allocation3], 0  ;;  %s1192_s0 = inlined_call_operand.hbm [shape: f32[8,16], index: 0, kind: input, shape index: {}]   ;;  %s1193_s1 = inlined_call_operand.hbm [shape: bf16[768,128], index: 1, kind: input, shape index: {}]   ;;  %s1194_s2 = inlined_call_operand.hbm [shape: f32[8,128], index: 2, kind: input, shape index: {}]   ;;  %s1195_s3 = inlined_call_operand.hbm [shape: f32[8,128], index: 3, kind: output, shape index: {}]  }
   0x1   :  { %9 = vsyncpa [#allocation6], 0 }
   0x2   :  { %10 = vsyncpa [#allocation4], 0  ;;  %s1041_s12 = smov [#allocation5]   ;;  %s947_s16 = scalar_lea.hbm %s1193_s1, 6144 }
   0x3   :  { %s26_s13 = sshll.u32 %s1041_s12, 4  ;;  %p948_p0 = scmp.ne.s32.totalorder %s1193_s1, %s947_s16  ;;  %s27_s13 = int_to_ptr.vmem [resolvable:$true] %s26_s13 }
   0x4   :  { %p951_p1 = scmp.lt.u32.totalorder %s947_s16, %s1193_s1 }
   0x6   :  { %p953_p2 = pnand %p951_p1, %p948_p0 }
   0x8   :  { %956 = shalt.err (!%p953_p2)
}
   0x9   :  { %s957_s21 = scalar_lea.vmem %s27_s13, 6144  ;;  %p962_p4 = scmp.lt.s32.totalorder %s27_s13, %s27_s13 }
   0xa   :  { %p958_p3 = scmp.ne.s32.totalorder %s27_s13, %s957_s21  ;;  %p963_p5 = scmp.lt.s32.totalorder %s957_s21, %s957_s21 }
   0xc   :  { %p964_p6 = por %p963_p5, %p962_p4 }
   0xe   :  { %p965_p7 = pnand %p964_p6, %p958_p3 }
  0x10   :  { %968 = shalt.err (!%p965_p7)
}
  0x11   :  { %s1042_s22 = smov 64   ;;  %s1043_s23 = smov 4  }
  0x12   :  { %32 = dma.hbm_to_vmem [thread:$0]  %s1193_s1, 6144, %s27_s13, [#allocation6], %s1042_s22, %s1042_s22, %s1043_s23  }
  0x13   :  { %s1044_s26 = smov [#allocation2]   ;;  %s1045_s28 = smov [#allocation7]  }
  0x14   :  { %s17_s27 = sshll.u32 %s1044_s26, 4  ;;  %s39_s29 = sshll.u32 %s1045_s28, 4  ;;  %s18_s27 = int_to_ptr.vmem [resolvable:$true] %s17_s27  ;;  %s40_s29 = int_to_ptr.vmem [resolvable:$true] %s39_s29 }
  0x15   :  { %s969_s5 = scalar_lea.hbm %s1192_s0, 128 }
  0x16   :  { %p970_p8 = scmp.ne.s32.totalorder %s1192_s0, %s969_s5  ;;  %p973_p9 = scmp.lt.u32.totalorder %s969_s5, %s1192_s0 }
  0x18   :  { %p975_p10 = pnand %p973_p9, %p970_p8 }
  0x1a   :  { %978 = shalt.err (!%p975_p10)
}
  0x1b   :  { %s979_s1 = scalar_lea.vmem %s18_s27, 128  ;;  %p984_p12 = scmp.lt.s32.totalorder %s18_s27, %s18_s27 }
  0x1c   :  { %p980_p11 = scmp.ne.s32.totalorder %s18_s27, %s979_s1  ;;  %p985_p13 = scmp.lt.s32.totalorder %s979_s1, %s979_s1 }
  0x1e   :  { %p986_p0 = por %p985_p13, %p984_p12 }
  0x20   :  { %p987_p1 = pnand %p986_p0, %p980_p11 }
  0x22   :  { %990 = shalt.err (!%p987_p1)
}
  0x23   :  { %20 = dma.hbm_to_vmem [thread:$0]  %s1192_s0, 128, %s18_s27, [#allocation3]  }
  0x24   :  { %s991_s14 = scalar_lea.hbm %s1194_s2, 128 }
  0x25   :  { %p992_p2 = scmp.ne.s32.totalorder %s1194_s2, %s991_s14  ;;  %p995_p3 = scmp.lt.u32.totalorder %s991_s14, %s1194_s2 }
  0x27   :  { %p997_p4 = pnand %p995_p3, %p992_p2 }
  0x29   :  { %1000 = shalt.err (!%p997_p4)
}
  0x2a   :  { %s1001_s19 = scalar_lea.vmem %s40_s29, 128  ;;  %p1006_p6 = scmp.lt.s32.totalorder %s40_s29, %s40_s29 }
  0x2b   :  { %p1002_p5 = scmp.ne.s32.totalorder %s40_s29, %s1001_s19  ;;  %p1007_p7 = scmp.lt.s32.totalorder %s1001_s19, %s1001_s19 }
  0x2d   :  { %p1008_p8 = por %p1007_p7, %p1006_p6 }
  0x2f   :  { %p1009_p9 = pnand %p1008_p8, %p1002_p5 }
  0x31   :  { %1012 = shalt.err (!%p1009_p9)
}
  0x32   :  { %42 = dma.hbm_to_vmem [thread:$0]  %s1194_s2, 128, %s40_s29, [#allocation6]  }
  0x33   :  { %1035 = dma.done.wait [#allocation3], 128  }
  0x34   :  { %1036 = vsyncadd [#allocation3], 4294967168 }
  0x35   :  { %1037 = dma.done.wait [#allocation6], 6272  }
  0x36   :  { %1038 = vsyncadd [#allocation6], 4294961024  ;;  %v1046_v0 = vmov 0.0   ;;  %vm1047_vm0 = vmmov 0   ;;  %v900_v1 = vld [vmem:[#allocation5] sm:$0xff]   ;;  %v53_v2 = vld [vmem:[#allocation2] sm:$0xff]  ;;  %v55_v18 = vlaneseq }
  0x37   :  { %786 = vmatprep.subr.bf16.mxu0 %v1046_v0  ;;  %788 = vmatprep.mubr.msk.bf16.mxu0 %vm1047_vm0, %v1046_v0  ;;  %v63_v3 = vpack.c.bf16 %v53_v2, %v53_v2  ;;  %vm74_vm1 = vcmask 130048   ;;  %v901_v4 = vld [vmem:[#allocation5 + $0x40] sm:$0xff]   ;;  %v902_v5 = vld [vmem:[#allocation5 + $0x48] sm:$0xff]   ;;  %v903_v6 = vld [vmem:[#allocation5 + $0x50] sm:$0xff]   ;;  %s1048_s2 = smov [#allocation8]  }
  0x38   :  { %792 = vmatprep.subr.bf16.mxu1 %v1046_v0  ;;  %808 = vmatprep.mubr.msk.bf16.mxu1 %vm1047_vm0, %v1046_v0  ;;  %v904_v7 = vld [vmem:[#allocation5 + $0x58] sm:$0xff]   ;;  %v905_v8 = vld [vmem:[#allocation5 + $0x60] sm:$0xff]   ;;  %v906_v9 = vld [vmem:[#allocation5 + $0x68] sm:$0xff]   ;;  %v1129_v19 = vshrl.u32 %v55_v18, 7  ;;  %s687_s21 = sshll.u32 %s1048_s2, 4  ;;  %s688_s21 = int_to_ptr.vmem [resolvable:$true] %s687_s21 }
  0x39   :  { %787 = vmatpush3.bf16.msra.mxu0 %v900_v1  ;;  %793 = vmatpush3.bf16.msra.mxu1 %v901_v4  ;;  %v907_v10 = vld [vmem:[#allocation5 + $0x70] sm:$0xff]   ;;  %v908_v11 = vld [vmem:[#allocation5 + $0x78] sm:$0xff]   ;;  %v909_v12 = vld [vmem:[#allocation5 + $0x80] sm:$0xff]   ;;  %s1013_s22 = scalar_lea.vmem %s688_s21, 128  ;;  %p1018_p11 = scmp.lt.s32.totalorder %s688_s21, %s688_s21 }
  0x3a   :  { %812 = vmatprep.subr.bf16.mxu0 %v1046_v0  ;;  %794 = vmatprep.subr.bf16.mxu1 %v1046_v0  ;;  %v910_v13 = vld [vmem:[#allocation5 + $0x88] sm:$0xff]   ;;  %v911_v14 = vld [vmem:[#allocation5 + $0x90] sm:$0xff]   ;;  %v912_v15 = vld [vmem:[#allocation5 + $0x98] sm:$0xff]   ;;  %v66_v20 = vsub.s32 0, %v1129_v19  ;;  %v138_v38 = vsub.s32 1, %v1129_v19  ;;  %v248_v52 = vsub.s32 2, %v1129_v19  ;;  %p1014_p10 = scmp.ne.s32.totalorder %s688_s21, %s1013_s22  ;;  %p1019_p12 = scmp.lt.s32.totalorder %s1013_s22, %s1013_s22 }
  0x3b   :  { %v913_v16 = vld [vmem:[#allocation5 + $0xa0] sm:$0xff]   ;;  %v914_v17 = vld [vmem:[#allocation5 + $0xa8] sm:$0xff]   ;;  %v915_v30 = vld [vmem:[#allocation5 + $0xb0] sm:$0xff]  }
  0x3c   :  { %789 = vmatmul.mubr.msk.bf16.vlgmr.msra.gmra.mrb[0].mxu0 %vm74_vm1, %v63_v3  ;;  %v1132_v21 = vld [vmem:[#allocation7] sm:$0xff]  ;;  %v916_v31 = vld [vmem:[#allocation5 + $0xb8] sm:$0xff]   ;;  %v918_v33 = vld [vmem:[#allocation5 + $0xc8] sm:$0xff]   ;;  %p1020_p13 = por %p1019_p12, %p1018_p11 }
  0x3d   :  { %828 = vmatprep.mubr.msk.bf16.mxu0 %vm1047_vm0, %v1046_v0  ;;  %795 = vmatpush3.bf16.msra.mxu1 %v902_v5  ;;  %v67_v22 = vrot.slane %v1132_v21, %v66_v20  ;;  %v917_v32 = vld [vmem:[#allocation5 + $0xc0] sm:$0xff]   ;;  %v919_v34 = vld [vmem:[#allocation5 + $0xd0] sm:$0xff]   ;;  %v920_v35 = vld [vmem:[#allocation5 + $0xd8] sm:$0xff]   ;;  %v139_v39 = vrot.slane %v1132_v21, %v138_v38  ;;  %v249_v53 = vrot.slane %v1132_v21, %v248_v52  ;;  %v358_v5 = vsub.s32 3, %v1129_v19 }
  0x3e   :  { %796 = vmatprep.subr.bf16.mxu1 %v1046_v0  ;;  %813 = vmatpush3.bf16.msra.mxu0 %v909_v12  ;;  %v921_v36 = vld [vmem:[#allocation5 + $0xe0] sm:$0xff]   ;;  %v922_v37 = vld [vmem:[#allocation5 + $0xe8] sm:$0xff]   ;;  %v923_v47 = vld [vmem:[#allocation5 + $0xf0] sm:$0xff]   ;;  %p1021_p0 = pnand %p1020_p13, %p1014_p10 }
  0x3f   :  { %814 = vmatprep.subr.bf16.mxu0 %v1046_v0  ;;  %v924_v48 = vld [vmem:[#allocation5 + $0xf8] sm:$0xff]   ;;  %v925_v49 = vld [vmem:[#allocation5 + $0x100] sm:$0xff]   ;;  %v926_v50 = vld [vmem:[#allocation5 + $0x108] sm:$0xff]  }
  0x40   :  { %v927_v51 = vld [vmem:[#allocation5 + $0x110] sm:$0xff]   ;;  %v928_v61 = vld [vmem:[#allocation5 + $0x118] sm:$0xff]   ;;  %v929_v62 = vld [vmem:[#allocation5 + $0x120] sm:$0xff]  }
  0x41   :  { %797 = vmatpush3.bf16.msra.mxu1 %v903_v6  ;;  %v930_v63 = vld [vmem:[#allocation5 + $0x128] sm:$0xff]   ;;  %v931_v1 = vld [vmem:[#allocation5 + $0x130] sm:$0xff]   ;;  %v932_v2 = vld [vmem:[#allocation5 + $0x138] sm:$0xff]   ;;  %v359_v6 = vrot.slane %v1132_v21, %v358_v5 }
  0x42   :  { %798 = vmatprep.subr.bf16.mxu1 %v1046_v0  ;;  %815 = vmatpush3.bf16.msra.mxu0 %v910_v13  ;;  %v933_v3 = vld [vmem:[#allocation5 + $0x140] sm:$0xff]   ;;  %v934_v4 = vld [vmem:[#allocation5 + $0x148] sm:$0xff]   ;;  %v56_v13 = vand.u32 127, %v55_v18  ;;  %v935_v20 = vld [vmem:[#allocation5 + $0x150] sm:$0xff]  }
  0x43   :  { %816 = vmatprep.subr.bf16.mxu0 %v1046_v0  ;;  %v938_v18 = vld [vmem:[#allocation5 + $0x168] sm:$0xff]  }
  0x44   :  { %vm58_vm2 = vcmp.lt.s32.totalorder %v56_v13, 8  ;;  %vm57_vm3 = vcmp.lt.s32.totalorder %v56_v13, 4  ;;  %vm60_vm4 = vcmp.lt.s32.totalorder %v56_v13, 6  ;;  %vm59_vm5 = vcmp.lt.s32.totalorder %v56_v13, 3 }
  0x45   :  { %799 = vmatpush3.bf16.msra.mxu1 %v904_v7 }
  0x46   :  { %800 = vmatprep.subr.bf16.mxu1 %v1046_v0  ;;  %817 = vmatpush3.bf16.msra.mxu0 %v911_v14 }
  0x47   :  { %818 = vmatprep.subr.bf16.mxu0 %v1046_v0 }
  0x49   :  { %801 = vmatpush3.bf16.msra.mxu1 %v905_v8 }
  0x4a   :  { %802 = vmatprep.subr.bf16.mxu1 %v1046_v0  ;;  %819 = vmatpush3.bf16.msra.mxu0 %v912_v15 }
  0x4b   :  { %820 = vmatprep.subr.bf16.mxu0 %v1046_v0 }
  0x4d   :  { %803 = vmatpush3.bf16.msra.mxu1 %v906_v9 }
  0x4e   :  { %804 = vmatprep.subr.bf16.mxu1 %v1046_v0  ;;  %821 = vmatpush3.bf16.msra.mxu0 %v913_v16 }
  0x4f   :  { %822 = vmatprep.subr.bf16.mxu0 %v1046_v0 }
  0x51   :  { %805 = vmatpush3.bf16.msra.mxu1 %v907_v10 }
  0x52   :  { %806 = vmatprep.subr.bf16.mxu1 %v1046_v0  ;;  %823 = vmatpush3.bf16.msra.mxu0 %v914_v17 }
  0x53   :  { %824 = vmatprep.subr.bf16.mxu0 %v1046_v0 }
  0x55   :  { %807 = vmatpush3.bf16.msra.mxu1 %v908_v11 }
  0x56   :  { %832 = vmatprep.subr.bf16.mxu1 %v1046_v0  ;;  %825 = vmatpush3.bf16.msra.mxu0 %v915_v30 }
  0x57   :  { %826 = vmatprep.subr.bf16.mxu0 %v1046_v0 }
  0x5a   :  { %827 = vmatpush3.bf16.msra.mxu0 %v916_v31 }
  0x5b   :  { %852 = vmatprep.subr.bf16.mxu0 %v1046_v0 }
 0x10f   :  { %v112_v23 = vpop.f32.mrb[0].mxu0 }
 0x110   :  { %v113_v24 = vadd.f32 %v112_v23, %v67_v22  ;;  %v790_v25 = vpop.f32.mrb[1].mxu0  ;;  %v936_v22 = vld [vmem:[#allocation5 + $0x158] sm:$0xff]   ;;  %v937_v23 = vld [vmem:[#allocation5 + $0x160] sm:$0xff]  }
 0x111   :  { %v115_v26 = vpop.f32.mrb[2].mxu0  ;;  %v940_v25 = vld [vmem:[#allocation5 + $0x178] sm:$0xff]  }
 0x112   :  { %v118_v27 = vmax.f32 %v113_v24, 0.0  ;;  %v791_v28 = vpop.f32.mrb[3].mxu0  ;;  %v939_v24 = vld [vmem:[#allocation5 + $0x170] sm:$0xff]   ;;  %v471_v26 = vsub.s32 4, %v1129_v19 }
 0x114   :  { %v135_v29 = vpack.c.bf16 %v118_v27, %v118_v27  ;;  %v472_v27 = vrot.slane %v1132_v21, %v471_v26 }
 0x116   :  { %809 = vmatmul.mubr.bf16.vlgmr.msra.gmra.mrb[0].mxu1 %v135_v29 }
 0x117   :  { %848 = vmatprep.mubr.msk.bf16.mxu1 %vm1047_vm0, %v1046_v0  ;;  %833 = vmatpush3.bf16.msra.mxu1 %v917_v32 }
 0x118   :  { %834 = vmatprep.subr.bf16.mxu1 %v1046_v0 }
 0x11b   :  { %835 = vmatpush3.bf16.msra.mxu1 %v918_v33 }
 0x11c   :  { %836 = vmatprep.subr.bf16.mxu1 %v1046_v0 }
 0x11f   :  { %837 = vmatpush3.bf16.msra.mxu1 %v919_v34 }
 0x120   :  { %838 = vmatprep.subr.bf16.mxu1 %v1046_v0 }
 0x123   :  { %839 = vmatpush3.bf16.msra.mxu1 %v920_v35 }
 0x124   :  { %840 = vmatprep.subr.bf16.mxu1 %v1046_v0 }
 0x127   :  { %841 = vmatpush3.bf16.msra.mxu1 %v921_v36 }
 0x128   :  { %842 = vmatprep.subr.bf16.mxu1 %v1046_v0 }
 0x12b   :  { %843 = vmatpush3.bf16.msra.mxu1 %v922_v37 }
 0x12c   :  { %844 = vmatprep.subr.bf16.mxu1 %v1046_v0 }
 0x12f   :  { %845 = vmatpush3.bf16.msra.mxu1 %v923_v47 }
 0x130   :  { %846 = vmatprep.subr.bf16.mxu1 %v1046_v0 }
 0x133   :  { %847 = vmatpush3.bf16.msra.mxu1 %v924_v48 }
 0x134   :  { %872 = vmatprep.subr.bf16.mxu1 %v1046_v0 }
 0x1e9   :  { %v222_v40 = vpop.f32.mrb[0].mxu1 }
 0x1ea   :  { %v223_v41 = vadd.f32 %v222_v40, %v139_v39  ;;  %v810_v42 = vpop.f32.mrb[1].mxu1  ;;  %v586_v39 = vsub.s32 5, %v1129_v19 }
 0x1eb   :  { %v225_v43 = vpop.f32.mrb[2].mxu1 }
 0x1ec   :  { %v228_v44 = vmax.f32 %v223_v41, 0.0  ;;  %v811_v45 = vpop.f32.mrb[3].mxu1  ;;  %v587_v40 = vrot.slane %v1132_v21, %v586_v39 }
 0x1ee   :  { %v245_v46 = vpack.c.bf16 %v228_v44, %v228_v44 }
 0x1f0   :  { %829 = vmatmul.mubr.bf16.vlgmr.msra.gmra.mrb[4].mxu0 %v245_v46 }
 0x1f1   :  { %868 = vmatprep.mubr.msk.bf16.mxu0 %vm1047_vm0, %v1046_v0  ;;  %853 = vmatpush3.bf16.msra.mxu0 %v925_v49 }
 0x1f2   :  { %854 = vmatprep.subr.bf16.mxu0 %v1046_v0 }
 0x1f5   :  { %855 = vmatpush3.bf16.msra.mxu0 %v926_v50 }
 0x1f6   :  { %856 = vmatprep.subr.bf16.mxu0 %v1046_v0 }
 0x1f9   :  { %857 = vmatpush3.bf16.msra.mxu0 %v927_v51 }
 0x1fa   :  { %858 = vmatprep.subr.bf16.mxu0 %v1046_v0 }
 0x1fd   :  { %859 = vmatpush3.bf16.msra.mxu0 %v928_v61 }
 0x1fe   :  { %860 = vmatprep.subr.bf16.mxu0 %v1046_v0 }
 0x201   :  { %861 = vmatpush3.bf16.msra.mxu0 %v929_v62 }
 0x202   :  { %862 = vmatprep.subr.bf16.mxu0 %v1046_v0 }
 0x205   :  { %863 = vmatpush3.bf16.msra.mxu0 %v930_v63 }
 0x206   :  { %864 = vmatprep.subr.bf16.mxu0 %v1046_v0 }
 0x209   :  { %865 = vmatpush3.bf16.msra.mxu0 %v931_v1 }
 0x20a   :  { %866 = vmatprep.subr.bf16.mxu0 %v1046_v0 }
 0x20d   :  { %867 = vmatpush3.bf16.msra.mxu0 %v932_v2 }
 0x2c3   :  { %v332_v54 = vpop.f32.mrb[4].mxu0 }
 0x2c4   :  { %v333_v55 = vadd.f32 %v332_v54, %v249_v53  ;;  %v830_v56 = vpop.f32.mrb[5].mxu0 }
 0x2c5   :  { %v335_v57 = vpop.f32.mrb[6].mxu0 }
 0x2c6   :  { %v338_v58 = vmax.f32 %v333_v55, 0.0  ;;  %v831_v59 = vpop.f32.mrb[7].mxu0 }
 0x2c8   :  { %v355_v60 = vpack.c.bf16 %v338_v58, %v338_v58 }
 0x2ca   :  { %849 = vmatmul.mubr.bf16.vlgmr.msra.gmra.mrb[4].mxu1 %v355_v60 }
 0x2cb   :  { %888 = vmatprep.mubr.msk.bf16.mxu1 %vm1047_vm0, %v1046_v0  ;;  %873 = vmatpush3.bf16.msra.mxu1 %v933_v3 }
 0x2cc   :  { %874 = vmatprep.subr.bf16.mxu1 %v1046_v0 }
 0x2cf   :  { %875 = vmatpush3.bf16.msra.mxu1 %v934_v4 }
 0x2d0   :  { %876 = vmatprep.subr.bf16.mxu1 %v1046_v0 }
 0x2d3   :  { %877 = vmatpush3.bf16.msra.mxu1 %v935_v20 }
 0x2d4   :  { %878 = vmatprep.subr.bf16.mxu1 %v1046_v0 }
 0x2d7   :  { %879 = vmatpush3.bf16.msra.mxu1 %v936_v22 }
 0x2d8   :  { %880 = vmatprep.subr.bf16.mxu1 %v1046_v0 }
 0x2db   :  { %881 = vmatpush3.bf16.msra.mxu1 %v937_v23 }
 0x2dc   :  { %882 = vmatprep.subr.bf16.mxu1 %v1046_v0 }
 0x2df   :  { %883 = vmatpush3.bf16.msra.mxu1 %v938_v18 }
 0x2e0   :  { %884 = vmatprep.subr.bf16.mxu1 %v1046_v0 }
 0x2e3   :  { %885 = vmatpush3.bf16.msra.mxu1 %v939_v24 }
 0x2e4   :  { %886 = vmatprep.subr.bf16.mxu1 %v1046_v0 }
 0x2e7   :  { %887 = vmatpush3.bf16.msra.mxu1 %v940_v25 }
 0x39d   :  { %v442_v7 = vpop.f32.mrb[4].mxu1 }
 0x39e   :  { %v443_v8 = vadd.f32 %v442_v7, %v359_v6  ;;  %v850_v9 = vpop.f32.mrb[5].mxu1 }
 0x39f   :  { %v445_v10 = vpop.f32.mrb[6].mxu1 }
 0x3a0   :  { %v448_v11 = vmul.f32 1.442695, %v443_v8  ;;  %v851_v12 = vpop.f32.mrb[7].mxu1 }
 0x3a2   :  { %941 = vpow2.f32 %v448_v11 }
 0x3ac   :  { %v942_v14 = vpop.eup %941 }
 0x3ad   :  { %v450_v15 = vsel %vm58_vm2, %v942_v14, 0.0 }
 0x3ae   :  { %v451_v16 = vsel %vm57_vm3, %v443_v8, %v450_v15 }
 0x3af   :  { %v468_v17 = vpack.c.bf16 %v451_v16, %v451_v16 }
 0x3b1   :  { %869 = vmatmul.mubr.bf16.vlgmr.msra.gmra.mrb[8].mxu0 %v468_v17 }
 0x484   :  { %v555_v28 = vpop.f32.mrb[8].mxu0 }
 0x485   :  { %v556_v29 = vadd.f32 %v555_v28, %v472_v27  ;;  %v870_v30 = vpop.f32.mrb[9].mxu0 }
 0x486   :  { %v558_v31 = vpop.f32.mrb[10].mxu0 }
 0x487   :  { %v561_v32 = vmax.f32 %v556_v29, 0.0  ;;  %v871_v33 = vpop.f32.mrb[11].mxu0 }
 0x489   :  { %v562_v34 = vadd.f32 1e-06, %v561_v32 }
 0x48b   :  { %943 = vlog2.f32 %v562_v34 }
 0x495   :  { %v944_v35 = vpop.eup %943 }
 0x496   :  { %v564_v36 = vmul.f32 0.6931472, %v944_v35 }
 0x498   :  { %v565_v37 = vsel %vm58_vm2, %v564_v36, 0.0 }
 0x499   :  { %v566_v0 = vsel %vm57_vm3, %v561_v32, %v565_v37 }
 0x49a   :  { %v583_v38 = vpack.c.bf16 %v566_v0, %v566_v0 }
 0x49c   :  { %889 = vmatmul.mubr.bf16.vlgmr.msra.gmra.mrb[8].mxu1 %v583_v38 }
 0x56f   :  { %v670_v41 = vpop.f32.mrb[8].mxu1 }
 0x570   :  { %v671_v42 = vadd.f32 %v670_v41, %v587_v40  ;;  %v890_v43 = vpop.f32.mrb[9].mxu1 }
 0x571   :  { %v673_v44 = vpop.f32.mrb[10].mxu1 }
 0x572   :  { %v676_v45 = vmul.f32 1.442695, %v671_v42  ;;  %v891_v46 = vpop.f32.mrb[11].mxu1 }
 0x574   :  { %945 = vpow2.f32 %v676_v45 }
 0x57e   :  { %v946_v47 = vpop.eup %945 }
 0x57f   :  { %v678_v48 = vsel %vm60_vm4, %v946_v47, 0.0 }
 0x580   :  { %v679_v49 = vsel %vm59_vm5, %v671_v42, %v678_v48 }
 0x581   :  { %680 = vst [vmem:[#allocation8] sm:$0xff] %v679_v49 }
 0x582   :  { %1024 = shalt.err (!%p1021_p0)
}
 0x583   :  { %s1025_s25 = scalar_lea.hbm %s1195_s3, 128 }
 0x584   :  { %p1026_p1 = scmp.ne.s32.totalorder %s1195_s3, %s1025_s25  ;;  %p1029_p2 = scmp.lt.u32.totalorder %s1025_s25, %s1195_s3 }
 0x586   :  { %p1031_p3 = pnand %p1029_p2, %p1026_p1 }
 0x588   :  { %1034 = shalt.err (!%p1031_p3)
}
 0x589   :  { %690 = dma.vmem_to_hbm [thread:$0]  %s688_s21, 128, %s1195_s3, [#allocation4]  }
 0x58a   :  { %1039 = dma.done.wait [#allocation4], 128  }
 0x58b   :  { %1040 = vsyncadd [#allocation4], 4294967168 }
 0x58c   :  { %694 = vsyncpa [#allocation3], 1 }
 0x58d   :  { %695 = vsyncpa [#allocation6], 1 }
 0x58e   :  { %696 = vsyncpa [#allocation4], 1 }

</bundles_post_ra>
